<compile_context>
chip_gen: v5e
topology: v5e:2x2
jax: 0.10.0
libtpu: 0.0.40
codegen_flags: <defaults>
</compile_context>

<pallas_src>
import functools
import math

import jax
import jax.numpy as jnp
from jax.experimental import pallas as pl
from jax.experimental.pallas import tpu as pltpu

_COS_EPS = 1e-8  # torch.nn.CosineSimilarity default eps


def _row_losses(a, p, n, scale_factor):
    """Per-row RankNet BCE-with-logits loss. Inputs (TB, D) -> (TB, 1) float32."""
    a = a.astype(jnp.float32)
    p = p.astype(jnp.float32)
    n = n.astype(jnp.float32)

    def rdot(x, y):  # VPU multiply + cross-lane reduce (XLU)
        return jnp.sum(x * y, axis=-1, keepdims=True)

    eps = jnp.float32(_COS_EPS)
    a_nrm = jnp.sqrt(rdot(a, a))
    p_nrm = jnp.sqrt(rdot(p, p))
    n_nrm = jnp.sqrt(rdot(n, n))
    pos = rdot(a, p) / jnp.maximum(a_nrm * p_nrm, eps)
    neg = rdot(a, n) / jnp.maximum(a_nrm * n_nrm, eps)

    m = pos - neg
    if scale_factor != 1.0:
        m = m * jnp.float32(scale_factor)

    # BCEWithLogits with target == 1  <=>  softplus(-m), stable form.
    # |m| <= 2 * scale_factor here (difference of cosines), so log(1 + exp(-|m|))
    # is well-conditioned in f32.
    return jnp.maximum(-m, 0.0) + jnp.log(1.0 + jnp.exp(-jnp.abs(m)))


def _ranknet_single_kernel(a_ref, p_ref, n_ref, out_ref, *, n_rows, scale_factor):
    # Gridless path: whole (B, D) batch resident in VMEM.
    loss = _row_losses(a_ref[...], p_ref[...], n_ref[...], scale_factor)
    out_ref[...] = jnp.sum(loss, keepdims=True) / jnp.float32(n_rows)  # mean reduction


def _ranknet_tiled_kernel(a_ref, p_ref, n_ref, out_ref, acc_ref, *, n_rows, scale_factor):
    # Streaming path: grid over row tiles, running-sum accumulator in VMEM scratch.
    i = pl.program_id(0)

    @pl.when(i == 0)
    def _():
        acc_ref[...] = jnp.zeros_like(acc_ref)

    loss = _row_losses(a_ref[...], p_ref[...], n_ref[...], scale_factor)
    tb = loss.shape[0]
    # Mask rows introduced by padding B up to a multiple of the tile size.
    row = i * tb + jax.lax.broadcasted_iota(jnp.int32, (tb, 1), 0)
    loss = jnp.where(row < n_rows, loss, 0.0)
    acc_ref[...] += jnp.sum(loss, keepdims=True)

    @pl.when(i == pl.num_programs(0) - 1)
    def _():
        out_ref[...] = acc_ref[...] / jnp.float32(n_rows)  # mean reduction


def _round_up(x, m):
    return (x + m - 1) // m * m


def ranknet_loss(anchors, positives, negatives, *, scale=False, start_temp=0.0,
                 tile_b=256):
    """RankNetLoss forward. anchors/positives/negatives: (B, D). Returns scalar mean loss."""
    B, D = anchors.shape
    assert positives.shape == (B, D) and negatives.shape == (B, D)

    # TODO(synk): learn_temp=True (temperature as a trainable nn.Parameter) is not
    # supported; the temperature is folded in as a static compile-time constant.
    scale_factor = math.exp(float(start_temp)) if scale else 1.0

    if B <= tile_b:
        # Single-block, gridless call: avoids the software-pipeline prologue/epilogue
        # and needs no padding/masking (block == full array dims).
        kernel = functools.partial(
            _ranknet_single_kernel, n_rows=B, scale_factor=scale_factor)
        out = pl.pallas_call(
            kernel,
            out_shape=jax.ShapeDtypeStruct((1, 1), jnp.float32),
        )(anchors, positives, negatives)
        return out[0, 0]

    # Tiled path: stream (tb, D) row chunks (double-buffered by BlockSpec pipelining),
    # accumulate the loss sum, finalize the mean on the last grid step.
    tb = _round_up(min(tile_b, B), 8)          # sublane-aligned tile
    Bp = _round_up(B, tb)
    if Bp != B:
        pad = ((0, Bp - B), (0, 0))
        anchors = jnp.pad(anchors, pad)
        positives = jnp.pad(positives, pad)
        negatives = jnp.pad(negatives, pad)

    kernel = functools.partial(
        _ranknet_tiled_kernel, n_rows=B, scale_factor=scale_factor)
    row_spec = pl.BlockSpec((tb, D), lambda i: (i, 0))
    out = pl.pallas_call(
        kernel,
        out_shape=jax.ShapeDtypeStruct((1, 1), jnp.float32),
        grid=(Bp // tb,),
        in_specs=[row_spec, row_spec, row_spec],
        out_specs=pl.BlockSpec((1, 1), lambda i: (0, 0)),
        scratch_shapes=[pltpu.VMEM((1, 1), jnp.float32)],
        compiler_params=pltpu.CompilerParams(
            dimension_semantics=("arbitrary",)),  # reduction axis (accumulator output)
    )(anchors, positives, negatives)
    return out[0, 0]


def _reference(anchors, positives, negatives, scale=False, start_temp=0.0):
    # Pure-JAX reference with identical math for a sanity check.
    def cos(x, y):
        num = jnp.sum(x * y, axis=-1)
        den = jnp.maximum(
            jnp.linalg.norm(x, axis=-1) * jnp.linalg.norm(y, axis=-1), _COS_EPS)
        return num / den

    m = cos(anchors, positives) - cos(anchors, negatives)
    if scale:
        m = m * jnp.float32(math.exp(float(start_temp)))
    loss = jnp.maximum(-m, 0.0) + jnp.log(1.0 + jnp.exp(-jnp.abs(m)))
    return jnp.mean(loss)


if __name__ == "__main__":
    key = jax.random.PRNGKey(0)
    k1, k2, k3, k4, k5, k6 = jax.random.split(key, 6)
    D = 32  # embedding_dim

    # Small case: exercises the gridless single-block path.
    B = 8
    a = jax.random.normal(k1, (B, D), dtype=jnp.float32)
    p = jax.random.normal(k2, (B, D), dtype=jnp.float32)
    n = jax.random.normal(k3, (B, D), dtype=jnp.float32)
    loss = jax.block_until_ready(ranknet_loss(a, p, n))
    ref = _reference(a, p, n)
    assert jnp.allclose(loss, ref, rtol=1e-5, atol=1e-6), (loss, ref)

    # Larger, non-multiple-of-tile case: exercises the tiled, accumulating path
    # (grid of 4 steps, last tile masked).
    B2 = 1000
    a2 = jax.random.normal(k4, (B2, D), dtype=jnp.float32)
    p2 = jax.random.normal(k5, (B2, D), dtype=jnp.float32)
    n2 = jax.random.normal(k6, (B2, D), dtype=jnp.float32)
    loss2 = jax.block_until_ready(ranknet_loss(a2, p2, n2, tile_b=256))
    ref2 = _reference(a2, p2, n2)
    assert jnp.allclose(loss2, ref2, rtol=1e-5, atol=1e-6), (loss2, ref2)

    print("KERNEL_OK")
</pallas_src>

<mosaic_0001>
module attributes {stable_mosaic.version = 11 : i64} {
  func.func @_ranknet_single_kernel(%arg0: memref<8x32xf32, #tpu.memory_space<vmem>>, %arg1: memref<8x32xf32, #tpu.memory_space<vmem>>, %arg2: memref<8x32xf32, #tpu.memory_space<vmem>>, %arg3: memref<1x1xf32, #tpu.memory_space<vmem>>) attributes {dimension_semantics = [], scalar_prefetch = 0 : i64, scratch_operands = 0 : i64, tpu.core_type = #tpu.core_type<tc>} {
    %c0 = arith.constant 0 : index
    %c0_0 = arith.constant 0 : index
    %0 = vector.load %arg0[%c0, %c0_0] : memref<8x32xf32, #tpu.memory_space<vmem>>, vector<8x32xf32>
    %c0_1 = arith.constant 0 : index
    %c0_2 = arith.constant 0 : index
    %1 = vector.load %arg1[%c0_1, %c0_2] : memref<8x32xf32, #tpu.memory_space<vmem>>, vector<8x32xf32>
    %c0_3 = arith.constant 0 : index
    %c0_4 = arith.constant 0 : index
    %2 = vector.load %arg2[%c0_3, %c0_4] : memref<8x32xf32, #tpu.memory_space<vmem>>, vector<8x32xf32>
    %3 = arith.mulf %0, %0 : vector<8x32xf32>
    %cst = arith.constant dense<0.000000e+00> : vector<8xf32>
    %4 = vector.multi_reduction <add>, %3, %cst [1] : vector<8x32xf32> to vector<8xf32>
    %5 = vector.shape_cast %4 : vector<8xf32> to vector<8x1xf32>
    %6 = math.sqrt %5 : vector<8x1xf32>
    %7 = arith.mulf %1, %1 : vector<8x32xf32>
    %cst_5 = arith.constant dense<0.000000e+00> : vector<8xf32>
    %8 = vector.multi_reduction <add>, %7, %cst_5 [1] : vector<8x32xf32> to vector<8xf32>
    %9 = vector.shape_cast %8 : vector<8xf32> to vector<8x1xf32>
    %10 = math.sqrt %9 : vector<8x1xf32>
    %11 = arith.mulf %2, %2 : vector<8x32xf32>
    %cst_6 = arith.constant dense<0.000000e+00> : vector<8xf32>
    %12 = vector.multi_reduction <add>, %11, %cst_6 [1] : vector<8x32xf32> to vector<8xf32>
    %13 = vector.shape_cast %12 : vector<8xf32> to vector<8x1xf32>
    %14 = math.sqrt %13 : vector<8x1xf32>
    %15 = arith.mulf %0, %1 : vector<8x32xf32>
    %cst_7 = arith.constant dense<0.000000e+00> : vector<8xf32>
    %16 = vector.multi_reduction <add>, %15, %cst_7 [1] : vector<8x32xf32> to vector<8xf32>
    %17 = vector.shape_cast %16 : vector<8xf32> to vector<8x1xf32>
    %18 = arith.mulf %6, %10 : vector<8x1xf32>
    %cst_8 = arith.constant 9.99999993E-9 : f32
    %19 = vector.broadcast %cst_8 : f32 to vector<8x1xf32>
    %20 = arith.maximumf %18, %19 : vector<8x1xf32>
    %21 = arith.divf %17, %20 : vector<8x1xf32>
    %22 = arith.mulf %0, %2 : vector<8x32xf32>
    %cst_9 = arith.constant dense<0.000000e+00> : vector<8xf32>
    %23 = vector.multi_reduction <add>, %22, %cst_9 [1] : vector<8x32xf32> to vector<8xf32>
    %24 = vector.shape_cast %23 : vector<8xf32> to vector<8x1xf32>
    %25 = arith.mulf %6, %14 : vector<8x1xf32>
    %cst_10 = arith.constant 9.99999993E-9 : f32
    %26 = vector.broadcast %cst_10 : f32 to vector<8x1xf32>
    %27 = arith.maximumf %25, %26 : vector<8x1xf32>
    %28 = arith.divf %24, %27 : vector<8x1xf32>
    %29 = arith.subf %21, %28 : vector<8x1xf32>
    %cst_11 = arith.constant 0.000000e+00 : f32
    %30 = vector.broadcast %cst_11 : f32 to vector<8x1xf32>
    %31 = arith.subf %30, %29 : vector<8x1xf32>
    %cst_12 = arith.constant 0.000000e+00 : f32
    %32 = vector.broadcast %cst_12 : f32 to vector<8x1xf32>
    %33 = arith.maximumf %31, %32 : vector<8x1xf32>
    %34 = math.absf %29 : vector<8x1xf32>
    %cst_13 = arith.constant 0.000000e+00 : f32
    %35 = vector.broadcast %cst_13 : f32 to vector<8x1xf32>
    %36 = arith.subf %35, %34 : vector<8x1xf32>
    %37 = math.exp %36 : vector<8x1xf32>
    %cst_14 = arith.constant 1.000000e+00 : f32
    %38 = vector.broadcast %cst_14 : f32 to vector<8x1xf32>
    %39 = arith.addf %38, %37 : vector<8x1xf32>
    %40 = math.log %39 : vector<8x1xf32>
    %41 = arith.addf %33, %40 : vector<8x1xf32>
    %42 = vector.shape_cast %41 : vector<8x1xf32> to vector<1x8x1xf32>
    %cst_15 = arith.constant dense<0.000000e+00> : vector<1xf32>
    %43 = vector.multi_reduction <add>, %42, %cst_15 [1, 2] : vector<1x8x1xf32> to vector<1xf32>
    %44 = vector.shape_cast %43 : vector<1xf32> to vector<1x1x1xf32>
    %45 = vector.extract %44[0, 0, 0] : f32 from vector<1x1x1xf32>
    %46 = vector.broadcast %45 : f32 to vector<1x1xf32>
    %cst_16 = arith.constant 8.000000e+00 : f32
    %47 = vector.broadcast %cst_16 : f32 to vector<1x1xf32>
    %48 = arith.divf %46, %47 : vector<1x1xf32>
    %c0_17 = arith.constant 0 : index
    %c0_18 = arith.constant 0 : index
    %49 = vector.load %arg3[%c0_17, %c0_18] : memref<1x1xf32, #tpu.memory_space<vmem>>, vector<1x1xf32>
    tpu.vector_store %arg3[%c0_17, %c0_18], %48 {strides = array<i32>} : memref<1x1xf32, #tpu.memory_space<vmem>>, vector<1x1xf32>,
    return
  }
}

</mosaic_0001>

<bundles_post_ra>
// kernel: tpu_custom_call.1
= control target key start
LH: loop header
LB: loop body
LE: loop exit
PB: predicated region body
PF: predicated region fallthrough
CT: control target
= control target key end

     0   :  { %8 = vsyncpa [#allocation3], 0  ;;  %s363_s0 = inlined_call_operand.hbm [shape: f32[8,32], index: 0, kind: input, shape index: {}]   ;;  %s364_s1 = inlined_call_operand.hbm [shape: f32[8,32], index: 1, kind: input, shape index: {}]   ;;  %s365_s2 = inlined_call_operand.hbm [shape: f32[8,32], index: 2, kind: input, shape index: {}]   ;;  %s366_s3 = inlined_call_operand.hbm [shape: f32[1,1], index: 3, kind: output, shape index: {}]  }
   0x1   :  { %9 = vsyncpa [#allocation6], 0  ;;  %s27_s14 = sshll.u32 %s364_s1, 4  ;;  %s28_s14 = int_to_ptr.hbm [resolvable:$true] %s27_s14 }
   0x2   :  { %10 = vsyncpa [#allocation4], 0  ;;  %s326_s15 = smov [#allocation5]   ;;  %s16_s19 = sshll.u32 %s363_s0, 4  ;;  %s17_s19 = int_to_ptr.hbm [resolvable:$true] %s16_s19 }
   0x3   :  { %s29_s16 = sshll.u32 %s326_s15, 4  ;;  %s327_s20 = smov [#allocation2]   ;;  %s30_s16 = int_to_ptr.vmem [resolvable:$true] %s29_s16 }
   0x4   :  { %32 = dma.hbm_to_vmem [thread:$0]  %s28_s14, 128, %s30_s16, [#allocation6]  }
   0x5   :  { %s18_s21 = sshll.u32 %s327_s20, 4  ;;  %s38_s24 = sshll.u32 %s365_s2, 4  ;;  %s19_s21 = int_to_ptr.vmem [resolvable:$true] %s18_s21  ;;  %s39_s24 = int_to_ptr.hbm [resolvable:$true] %s38_s24 }
   0x6   :  { %21 = dma.hbm_to_vmem [thread:$0]  %s17_s19, 128, %s19_s21, [#allocation3]  }
   0x7   :  { %s328_s1 = smov [#allocation7]  }
   0x8   :  { %s40_s25 = sshll.u32 %s328_s1, 4  ;;  %s41_s25 = int_to_ptr.vmem [resolvable:$true] %s40_s25 }
   0x9   :  { %43 = dma.hbm_to_vmem [thread:$0]  %s39_s24, 128, %s41_s25, [#allocation6]  }
   0xa   :  { %320 = dma.done.wait [#allocation3], 128  }
   0xb   :  { %321 = vsyncadd [#allocation3], 4294967168 }
   0xc   :  { %322 = dma.done.wait [#allocation6], 256  }
   0xd   :  { %323 = vsyncadd [#allocation6], 4294967040  ;;  %v58_v0 = vld [vmem:[#allocation7] sm:$0xff]  ;;  %vm60_vm0 = vcmask 261120   ;;  %v56_v1 = vld [vmem:[#allocation2] sm:$0xff]  ;;  %vm161_vm15 = vcmask 7168  }
   0xe   :  { %v92_v2 = vmul.f32 %v58_v0, %v58_v0  ;;  %v59_v3 = vmul.f32 %v56_v1, %v56_v1  ;;  %v129_v4 = vmul.f32 %v58_v0, %v56_v1  ;;  %v57_v5 = vld [vmem:[#allocation5] sm:$0xff]  ;;  %s330_s0 = smov [#allocation8]   ;;  %s190_s28 = sshll.u32 %s366_s3, 4  ;;  %s191_s28 = int_to_ptr.hbm [resolvable:$true] %s190_s28 }
   0xf   :  { %v76_v9 = vmul.f32 %v57_v5, %v57_v5  ;;  %v108_v10 = vmul.f32 %v57_v5, %v56_v1  ;;  %s188_s2 = sshll.u32 %s330_s0, 4  ;;  %s189_s2 = int_to_ptr.vmem [resolvable:$true] %s188_s2 }
  0x10   :  { %v93_v6 = vsel %vm60_vm0, %v92_v2, 0.0  ;;  %v61_v7 = vsel %vm60_vm0, %v59_v3, 0.0  ;;  %v130_v8 = vsel %vm60_vm0, %v129_v4, 0.0 }
  0x11   :  { %94 = vadd.xlane.f32.xlu1 %v93_v6  ;;  %62 = vadd.xlane.f32.xlu0 %v61_v7  ;;  %v77_v11 = vsel %vm60_vm0, %v76_v9, 0.0  ;;  %v109_v12 = vsel %vm60_vm0, %v108_v10, 0.0 }
  0x12   :  { %131 = vadd.xlane.f32.xlu2 %v130_v8 }
  0x19   :  { %78 = vadd.xlane.f32.xlu0 %v77_v11  ;;  %110 = vadd.xlane.f32.xlu1 %v109_v12 }
  0x84   :  { %v95_v13 = vpop.xlane.xlu1 %94  ;;  %v63_v14 = vpop.xlane.xlu0 %62 }
  0x85   :  { %208 = vrsqrt.f32 %v95_v13  ;;  %vm103_vm1 = vcmp.eq.f32.partialorder %v95_v13, inf  ;;  %vm105_vm2 = vcmp.eq.f32.partialorder %v95_v13, 0.0  ;;  %v106_v32 = vand.u32 2147483648, %v95_v13  ;;  %v132_v2 = vpop.xlane.xlu2 %131 }
  0x86   :  { %210 = vrsqrt.f32 %v63_v14  ;;  %vm71_vm3 = vcmp.eq.f32.partialorder %v63_v14, inf  ;;  %v74_v35 = vand.u32 2147483648, %v63_v14  ;;  %vm73_vm4 = vcmp.eq.f32.partialorder %v63_v14, 0.0 }
  0x8b   :  { %v209_v15 = vpop.eup %208 }
  0x8c   :  { %v211_v16 = vpop.eup %210  ;;  %v97_v17 = vmul.f32 %v209_v15, %v95_v13  ;;  %v79_v18 = vpop.xlane.xlu0 %78 }
  0x8d   :  { %v65_v19 = vmul.f32 %v211_v16, %v63_v14  ;;  %212 = vrsqrt.f32 %v79_v18  ;;  %vm87_vm5 = vcmp.eq.f32.partialorder %v79_v18, inf  ;;  %v90_v45 = vand.u32 2147483648, %v79_v18  ;;  %v111_v4 = vpop.xlane.xlu1 %110 }
  0x8e   :  { %v98_v20 = vmul.f32 %v209_v15, %v97_v17  ;;  %vm89_vm6 = vcmp.eq.f32.partialorder %v79_v18, 0.0 }
  0x8f   :  { %v66_v21 = vmul.f32 %v211_v16, %v65_v19 }
  0x90   :  { %v99_v22 = vmul.f32 0.5, %v98_v20 }
  0x91   :  { %v67_v23 = vmul.f32 0.5, %v66_v21 }
  0x92   :  { %v100_v24 = vsub.f32 1.5, %v99_v22 }
  0x93   :  { %v213_v25 = vpop.eup %212  ;;  %v68_v26 = vsub.f32 1.5, %v67_v23 }
  0x94   :  { %v101_v27 = vmul.f32 %v209_v15, %v100_v24  ;;  %v81_v28 = vmul.f32 %v213_v25, %v79_v18 }
  0x95   :  { %v69_v29 = vmul.f32 %v211_v16, %v68_v26 }
  0x96   :  { %v102_v30 = vmul.f32 %v101_v27, %v95_v13  ;;  %v82_v31 = vmul.f32 %v213_v25, %v81_v28 }
  0x97   :  { %v70_v33 = vmul.f32 %v69_v29, %v63_v14  ;;  %v329_v29 = vmov 8.0  }
  0x98   :  { %v104_v34 = vsel %vm103_vm1, %v95_v13, %v102_v30  ;;  %v83_v36 = vmul.f32 0.5, %v82_v31  ;;  %vm181_vm1 = vcmask 0  }
  0x99   :  { %v107_v37 = vsel %vm105_vm2, %v106_v32, %v104_v34  ;;  %v72_v38 = vsel %vm71_vm3, %v63_v14, %v70_v33 }
  0x9a   :  { %v75_v39 = vsel %vm73_vm4, %v74_v35, %v72_v38  ;;  %v84_v40 = vsub.f32 1.5, %v83_v36 }
  0x9b   :  { %v133_v41 = vmul.f32 %v107_v37, %v75_v39 }
  0x9c   :  { %v85_v42 = vmul.f32 %v213_v25, %v84_v40 }
  0x9d   :  { %v134_v43 = vmax.f32 %v133_v41, 1e-08 }
  0x9e   :  { %v86_v44 = vmul.f32 %v85_v42, %v79_v18 }
  0x9f   :  { %214 = vrcp.f32 %v134_v43  ;;  %v146_v57 = vand.u32 2147483648, %v134_v43  ;;  %vm140_vm8 = vweird.f32 %v134_v43  ;;  %v144_v58 = vand.u32 2147483647, %v134_v43 }
  0xa0   :  { %v88_v46 = vsel %vm87_vm5, %v79_v18, %v86_v44 }
  0xa1   :  { %v91_v47 = vsel %vm89_vm6, %v90_v45, %v88_v46  ;;  %v147_v0 = vor.u32 1.1754944e-38, %v146_v57  ;;  %vm145_vm11 = vcmp.eq.f32.partialorder %v144_v58, 8.507059e+37 }
  0xa2   :  { %v112_v48 = vmul.f32 %v91_v47, %v75_v39 }
  0xa4   :  { %v113_v49 = vmax.f32 %v112_v48, 1e-08 }
  0xa5   :  { %v215_v50 = vpop.eup %214 }
  0xa6   :  { %216 = vrcp.f32 %v113_v49  ;;  %v136_v51 = vmul.f32 %v215_v50, %v134_v43  ;;  %vm141_vm7 = vweird.f32 %v215_v50  ;;  %v125_v60 = vand.u32 2147483648, %v113_v49 }
  0xa7   :  { %vm142_vm9 = vmor %vm140_vm8, %vm141_vm7  ;;  %v123_v63 = vand.u32 2147483647, %v113_v49  ;;  %vm119_vm12 = vweird.f32 %v113_v49 }
  0xa8   :  { %v137_v52 = vsub.f32 1.0, %v136_v51  ;;  %v126_v5 = vor.u32 1.1754944e-38, %v125_v60 }
  0xa9   :  { %vm124_vm14 = vcmp.eq.f32.partialorder %v123_v63, 8.507059e+37 }
  0xaa   :  { %v138_v53 = vmul.f32 %v215_v50, %v137_v52 }
  0xac   :  { %v217_v54 = vpop.eup %216  ;;  %v139_v55 = vadd.f32 %v215_v50, %v138_v53 }
  0xad   :  { %v115_v56 = vmul.f32 %v217_v54, %v113_v49  ;;  %vm120_vm10 = vweird.f32 %v217_v54 }
  0xae   :  { %v143_v61 = vsel %vm142_vm9, %v215_v50, %v139_v55  ;;  %vm121_vm13 = vmor %vm119_vm12, %vm120_vm10 }
  0xaf   :  { %v116_v59 = vsub.f32 1.0, %v115_v56  ;;  %v148_v3 = vsel %vm145_vm11, %v147_v0, %v143_v61 }
  0xb0   :  { %v149_v8 = vmul.f32 %v148_v3, %v132_v2 }
  0xb1   :  { %v117_v62 = vmul.f32 %v217_v54, %v116_v59 }
  0xb3   :  { %v118_v1 = vadd.f32 %v217_v54, %v117_v62 }
  0xb5   :  { %v122_v6 = vsel %vm121_vm13, %v217_v54, %v118_v1 }
  0xb6   :  { %v127_v7 = vsel %vm124_vm14, %v126_v5, %v122_v6 }
  0xb7   :  { %v128_v9 = vmul.f32 %v127_v7, %v111_v4 }
  0xb9   :  { %v150_v10 = vsub.f32 %v128_v9, %v149_v8 }
  0xbb   :  { %v153_v11 = vand.u32 2147483647, %v150_v10  ;;  %v151_v16 = vsub.f32 0.0, %v150_v10 }
  0xbd   :  { %v154_v12 = vsub.f32 0.0, %v153_v11  ;;  %v152_v18 = vmax.f32 %v151_v16, 0.0 }
  0xbf   :  { %v155_v13 = vmul.f32 1.442695, %v154_v12 }
  0xc1   :  { %218 = vpow2.f32 %v155_v13 }
  0xc7   :  { %v219_v14 = vpop.eup %218 }
  0xc8   :  { %v157_v15 = vadd.f32 1.0, %v219_v14 }
  0xca   :  { %220 = vlog2.f32 %v157_v15 }
  0xcb   :  { %222 = vrcp.f32 %v329_v29 }
  0xd0   :  { %v221_v17 = vpop.eup %220 }
  0xd1   :  { %v159_v19 = vmul.f32 0.6931472, %v221_v17  ;;  %v223_v30 = vpop.eup %222 }
  0xd2   :  { %v174_v31 = vmul.f32 8.0, %v223_v30  ;;  %vm178_vm0 = vweird.f32 %v223_v30 }
  0xd3   :  { %v160_v20 = vadd.f32 %v159_v19, %v152_v18 }
  0xd4   :  { %v175_v32 = vsub.f32 1.0, %v174_v31 }
  0xd5   :  { %v162_v21 = vsel %vm161_vm15, %v160_v20, 0.0 }
  0xd6   :  { %163 = vadd.xlane.f32.xlu2 %v162_v21  ;;  %v176_v33 = vmul.f32 %v223_v30, %v175_v32 }
  0xd8   :  { %v177_v34 = vadd.f32 %v223_v30, %v176_v33 }
  0xda   :  { %v179_v35 = vsel %vm178_vm0, %v223_v30, %v177_v34 }
 0x149   :  { %v164_v22 = vpop.xlane.xlu2 %163 }
 0x14a   :  { %v165_v23 = vrot.slane %v164_v22, 4 }
 0x14c   :  { %v166_v24 = vadd.f32 %v165_v23, %v164_v22 }
 0x14e   :  { %v167_v25 = vrot.slane %v166_v24, 2 }
 0x150   :  { %v168_v26 = vadd.f32 %v167_v25, %v166_v24 }
 0x152   :  { %v169_v27 = vrot.slane %v168_v26, 1 }
 0x154   :  { %v170_v28 = vadd.f32 %v169_v27, %v168_v26 }
 0x156   :  { %201 = vpush %v170_v28 }
 0x187   :  { %s202_s29 = spop %201 }
 0x188   :  { %v172_v36 = vstv %s202_s29 }
 0x189   :  { %v180_v37 = vmul.f32 %v179_v35, %v172_v36 }
 0x18b   :  { %182 = vst.msk [vmem:[#allocation8] sm:$0x1] %vm181_vm1, %v180_v37 }
 0x18c   :  { %193 = dma.vmem_to_hbm [thread:$0]  %s189_s2, 16, %s191_s28, [#allocation4]  }
 0x18d   :  { %324 = dma.done.wait [#allocation4], 16  }
 0x18e   :  { %325 = vsyncadd [#allocation4], 4294967280 }
 0x18f   :  { %198 = vsyncpa [#allocation3], 1 }
 0x190   :  { %199 = vsyncpa [#allocation6], 1 }
 0x191   :  { %200 = vsyncpa [#allocation4], 1 }

</bundles_post_ra>
